<compile_context>
chip_gen: v7x
topology: tpu7x:2x2x1
jax: 0.10.0
libtpu: 0.0.40
codegen_flags: <defaults>
</compile_context>

<pallas_src>
import math

import jax
import jax.numpy as jnp
from jax import lax
from jax.experimental import pallas as pl
from jax.experimental.pallas import tpu as pltpu


def _round_up(a: int, b: int) -> int:
    return -(-a // b) * b


def _make_corr2d_kernel(kh: int, kw: int, tm: int, ow: int, pw: int,
                        sub: int, tbh: int):
    """Kernel body with all sizes baked in as Python ints."""
    ns = tm // sub
    has_halo = kh > 1

    def kernel(*refs):
        if has_halo:
            xm_ref, xh_ref, w_ref, b_ref, o_ref, bnd_ref = refs
        else:
            xm_ref, w_ref, b_ref, o_ref = refs
            xh_ref = bnd_ref = None

        # Hoist every scalar (SMEM) read out of the hot loops.
        wv = [[w_ref[i, j] for j in range(kw)] for i in range(kh)]
        bv = b_ref[0]

        def compute_subtile(src_ref, src_row0, out_row0):
            # Register-blocked (SUB, PW) accumulator; bias folded into the
            # first tap so there is no zeros-init pass and no extra +b pass.
            acc = None
            for i in range(kh):
                slab = src_ref[pl.ds(src_row0 + i, sub), :]
                for j in range(kw):
                    if j == 0:
                        tap = slab
                    else:
                        # tap[:, c] = slab[:, c + j]; wrapped/garbage lanes
                        # land only in columns >= OW, which are never stored.
                        tap = pltpu.roll(slab, shift=pw - j, axis=1)
                    term = tap * wv[i][j]
                    acc = term + bv if acc is None else acc + term
            o_ref[pl.ds(out_row0, sub), :] = acc[:, :ow]

        if has_halo:
            # Tiny boundary window: last SUB rows of this block + halo rows.
            bnd_ref[0:sub, :] = xm_ref[tm - sub:tm, :]
            bnd_ref[sub:sub + tbh, :] = xh_ref[...]

            if ns > 1:
                def body(s, carry):
                    l0 = pl.multiple_of(s * sub, sub)
                    compute_subtile(xm_ref, l0, l0)
                    return carry
                lax.fori_loop(0, ns - 1, body, 0)

            # Last sub-tile straddles the block boundary -> read the scratch.
            compute_subtile(bnd_ref, 0, (ns - 1) * sub)
        else:
            def body(s, carry):
                l0 = pl.multiple_of(s * sub, sub)
                compute_subtile(xm_ref, l0, l0)
                return carry
            lax.fori_loop(0, ns, body, 0)

    return kernel


def conv2d_forward(x: jax.Array, weight: jax.Array, bias: jax.Array) -> jax.Array:
    """Equivalent of Conv2D.forward: corr2d(x, weight) + bias (f32)."""
    x = jnp.asarray(x, jnp.float32)
    weight = jnp.asarray(weight, jnp.float32)
    bias = jnp.asarray(bias, jnp.float32).reshape((1,))

    H, W = x.shape
    KH, KW = weight.shape
    if H < KH or W < KW:
        raise ValueError(f"Input ({H},{W}) smaller than kernel ({KH},{KW}).")
    OH, OW = H - KH + 1, W - KW + 1

    # Lane-padded working width (padding is provided by the ragged block, not
    # by a host-side jnp.pad pass).
    PW = max(128, _round_up(W, 128))

    # Inner register sub-tile: acc / slab / tap each <= ~8 f32 vregs.
    SUB = max(8, min(256, (8 * 1024 // PW) // 8 * 8))
    if KH > 1:
        TBH = _round_up(KH - 1, 8)          # halo block rows (>= KH-1)
        SUB = max(SUB, TBH)                  # non-boundary sub-tiles never straddle
        L = SUB * TBH // math.gcd(SUB, TBH)  # TM must be a multiple of both
    else:
        TBH = 0
        L = SUB

    # Grid block: ~2 MiB per step so DMA time dominates the ~0.35 us per-step
    # overhead, but split rows in (at least) half so NT >= 2 feeds both v7x
    # TensorCores on anything non-trivial.
    target_block_bytes = 2 * 1024 * 1024
    TM_cap = max(L, (target_block_bytes // (PW * 4)) // L * L)
    rows_half = _round_up(max(-(-OH // 2), 1), L)
    TM = max(L, min(TM_cap, rows_half))
    NT = pl.cdiv(OH, TM)

    assert TM % 8 == 0 and PW % 128 == 0 and TM % SUB == 0
    assert KH == 1 or TM % TBH == 0

    kernel = _make_corr2d_kernel(KH, KW, TM, OW, PW, SUB, TBH)

    in_specs = [pl.BlockSpec((TM, PW), lambda t: (t, 0))]        # main rows
    operands = [x]
    if KH > 1:
        # Halo = first rows of the NEXT tile, expressed as a second BlockSpec
        # view of the same input (no host-side gather).  When the true halo
        # rows fall past H (their contributions are masked anyway) the block
        # index is clamped so the DMA never goes fully out of bounds.
        blk_per_tile = TM // TBH
        max_blk = (H - 1) // TBH
        in_specs.append(pl.BlockSpec(
            (TBH, PW),
            lambda t: (jnp.minimum((t + 1) * blk_per_tile, max_blk), 0)))
        operands.append(x)
    in_specs += [
        pl.BlockSpec(memory_space=pltpu.MemorySpace.SMEM),       # weight
        pl.BlockSpec(memory_space=pltpu.MemorySpace.SMEM),       # bias
    ]
    operands += [weight, bias]

    scratch_shapes = []
    if KH > 1:
        scratch_shapes.append(pltpu.VMEM((SUB + TBH, PW), jnp.float32))

    flops = 2 * OH * OW * KH * KW
    bytes_accessed = 4 * (NT * (TM + TBH) * PW + OH * OW + KH * KW + 1)

    out = pl.pallas_call(
        kernel,
        out_shape=jax.ShapeDtypeStruct((OH, OW), jnp.float32),   # exact shape
        grid=(NT,),
        in_specs=in_specs,
        out_specs=pl.BlockSpec((TM, OW), lambda t: (t, 0)),
        scratch_shapes=scratch_shapes,
        compiler_params=pltpu.CompilerParams(
            dimension_semantics=("parallel",),     # v7x: shard tiles over 2 TCs
            vmem_limit_bytes=32 * 1024 * 1024,     # blocks <= ~2 MiB: safe on
        ),                                         # v5e/v6e/v7x with dbl-buffer
        cost_estimate=pl.CostEstimate(
            flops=flops, transcendentals=0, bytes_accessed=bytes_accessed),
    )(*operands)

    return out


def corr2d_reference(x, k, bias):
    """Pure-JAX reference mirroring the PyTorch corr2d loop (verification)."""
    x = jnp.asarray(x, jnp.float32)
    k = jnp.asarray(k, jnp.float32)
    h, w = k.shape
    oh, ow = x.shape[0] - h + 1, x.shape[1] - w + 1
    out = jnp.zeros((oh, ow), jnp.float32)
    for i in range(h):
        for j in range(w):
            out = out + x[i:i + oh, j:j + ow] * k[i, j]
    return out + jnp.asarray(bias, jnp.float32).reshape((1,))[0]


if __name__ == "__main__":
    key = jax.random.PRNGKey(0)
    keys = jax.random.split(key, 8)

    cases = [
        # (H, W, KH, KW, bias_value)  -- case 1 is the module's toy setting.
        (16, 16, 3, 3, 0.0),      # single tile, width < 128
        (140, 200, 5, 4, 0.25),   # multi-tile grid, halo, non-128 width
        (300, 190, 3, 3, -0.5),   # multiple inner sub-tiles + boundary path
        (64, 160, 1, 5, 0.1),     # KH == 1: no halo input, no scratch
    ]

    for idx, (H, W, KH, KW, bval) in enumerate(cases):
        kx, kw_ = keys[2 * idx], keys[2 * idx + 1]
        x = jax.random.normal(kx, (H, W), dtype=jnp.float32)
        weight = jax.random.uniform(kw_, (KH, KW), dtype=jnp.float32)  # torch.rand
        bias = jnp.full((1,), bval, dtype=jnp.float32)

        out = jax.block_until_ready(conv2d_forward(x, weight, bias))
        ref = corr2d_reference(x, weight, bias)
        assert out.shape == (H - KH + 1, W - KW + 1)
        assert jnp.allclose(out, ref, atol=1e-4, rtol=1e-4), f"mismatch in case {idx}"

    print("KERNEL_OK")
</pallas_src>

<mosaic_0001>
module attributes {stable_mosaic.version = 11 : i64} {
  func.func @kernel(%arg0: i32, %arg1: memref<64x128xf32, #tpu.memory_space<vmem>>, %arg2: memref<8x128xf32, #tpu.memory_space<vmem>>, %arg3: memref<3x3xf32, #tpu.memory_space<smem>>, %arg4: memref<1xf32, #tpu.memory_space<smem>>, %arg5: memref<64x14xf32, #tpu.memory_space<vmem>>, %arg6: memref<72x128xf32, #tpu.memory_space<vmem>>) attributes {dimension_semantics = [#tpu.dimension_semantics<parallel>], iteration_bounds = array<i64: 1>, scalar_prefetch = 0 : i64, scratch_operands = 1 : i64, tpu.core_type = #tpu.core_type<tc>, window_params = [{transform_indices = @transform_0, window_bounds = array<i64: 64, 128>}, {transform_indices = @transform_1, window_bounds = array<i64: 8, 128>}, {transform_indices = @transform_2, window_bounds = array<i64: 3, 3>}, {transform_indices = @transform_3, window_bounds = array<i64: 1>}, {transform_indices = @transform_4, window_bounds = array<i64: 64, 14>}]} {
    %c0 = arith.constant 0 : index
    %c0_0 = arith.constant 0 : index
    %0 = memref.load %arg3[%c0, %c0_0] : memref<3x3xf32, #tpu.memory_space<smem>>
    %c0_1 = arith.constant 0 : index
    %c1 = arith.constant 1 : index
    %1 = memref.load %arg3[%c0_1, %c1] : memref<3x3xf32, #tpu.memory_space<smem>>
    %c0_2 = arith.constant 0 : index
    %c2 = arith.constant 2 : index
    %2 = memref.load %arg3[%c0_2, %c2] : memref<3x3xf32, #tpu.memory_space<smem>>
    %c1_3 = arith.constant 1 : index
    %c0_4 = arith.constant 0 : index
    %3 = memref.load %arg3[%c1_3, %c0_4] : memref<3x3xf32, #tpu.memory_space<smem>>
    %c1_5 = arith.constant 1 : index
    %c1_6 = arith.constant 1 : index
    %4 = memref.load %arg3[%c1_5, %c1_6] : memref<3x3xf32, #tpu.memory_space<smem>>
    %c1_7 = arith.constant 1 : index
    %c2_8 = arith.constant 2 : index
    %5 = memref.load %arg3[%c1_7, %c2_8] : memref<3x3xf32, #tpu.memory_space<smem>>
    %c2_9 = arith.constant 2 : index
    %c0_10 = arith.constant 0 : index
    %6 = memref.load %arg3[%c2_9, %c0_10] : memref<3x3xf32, #tpu.memory_space<smem>>
    %c2_11 = arith.constant 2 : index
    %c1_12 = arith.constant 1 : index
    %7 = memref.load %arg3[%c2_11, %c1_12] : memref<3x3xf32, #tpu.memory_space<smem>>
    %c2_13 = arith.constant 2 : index
    %c2_14 = arith.constant 2 : index
    %8 = memref.load %arg3[%c2_13, %c2_14] : memref<3x3xf32, #tpu.memory_space<smem>>
    %c0_15 = arith.constant 0 : index
    %9 = memref.load %arg4[%c0_15] : memref<1xf32, #tpu.memory_space<smem>>
    %c0_16 = arith.constant 0 : index
    %c0_17 = arith.constant 0 : index
    %10 = vector.load %arg1[%c0_16, %c0_17] : memref<64x128xf32, #tpu.memory_space<vmem>>, vector<64x128xf32>
    %c0_18 = arith.constant 0 : index
    %c0_19 = arith.constant 0 : index
    %11 = vector.load %arg6[%c0_18, %c0_19] : memref<72x128xf32, #tpu.memory_space<vmem>>, vector<64x128xf32>
    tpu.vector_store %arg6[%c0_18, %c0_19], %10 {strides = array<i32>} : memref<72x128xf32, #tpu.memory_space<vmem>>, vector<64x128xf32>,
    %c0_20 = arith.constant 0 : index
    %c0_21 = arith.constant 0 : index
    %12 = vector.load %arg2[%c0_20, %c0_21] : memref<8x128xf32, #tpu.memory_space<vmem>>, vector<8x128xf32>
    %c64 = arith.constant 64 : index
    %c0_22 = arith.constant 0 : index
    %13 = vector.load %arg6[%c64, %c0_22] : memref<72x128xf32, #tpu.memory_space<vmem>>, vector<8x128xf32>
    tpu.vector_store %arg6[%c64, %c0_22], %12 {strides = array<i32>} : memref<72x128xf32, #tpu.memory_space<vmem>>, vector<8x128xf32>,
    %c0_23 = arith.constant 0 : index
    %c0_24 = arith.constant 0 : index
    %14 = vector.load %arg6[%c0_23, %c0_24] : memref<72x128xf32, #tpu.memory_space<vmem>>, vector<64x128xf32>
    %15 = vector.broadcast %0 : f32 to vector<64x128xf32>
    %16 = arith.mulf %14, %15 : vector<64x128xf32>
    %17 = vector.broadcast %9 : f32 to vector<64x128xf32>
    %18 = arith.addf %16, %17 : vector<64x128xf32>
    %c127_i32 = arith.constant 127 : i32
    %19 = tpu.dynamic_rotate %14 by %c127_i32 dim 1 : vector<64x128xf32>, i32 -> vector<64x128xf32>
    %20 = vector.broadcast %1 : f32 to vector<64x128xf32>
    %21 = arith.mulf %19, %20 : vector<64x128xf32>
    %22 = arith.addf %18, %21 : vector<64x128xf32>
    %c126_i32 = arith.constant 126 : i32
    %23 = tpu.dynamic_rotate %14 by %c126_i32 dim 1 : vector<64x128xf32>, i32 -> vector<64x128xf32>
    %24 = vector.broadcast %2 : f32 to vector<64x128xf32>
    %25 = arith.mulf %23, %24 : vector<64x128xf32>
    %26 = arith.addf %22, %25 : vector<64x128xf32>
    %c1_25 = arith.constant 1 : index
    %c0_26 = arith.constant 0 : index
    %27 = vector.load %arg6[%c1_25, %c0_26] : memref<72x128xf32, #tpu.memory_space<vmem>>, vector<64x128xf32>
    %28 = vector.broadcast %3 : f32 to vector<64x128xf32>
    %29 = arith.mulf %27, %28 : vector<64x128xf32>
    %30 = arith.addf %26, %29 : vector<64x128xf32>
    %c127_i32_27 = arith.constant 127 : i32
    %31 = tpu.dynamic_rotate %27 by %c127_i32_27 dim 1 : vector<64x128xf32>, i32 -> vector<64x128xf32>
    %32 = vector.broadcast %4 : f32 to vector<64x128xf32>
    %33 = arith.mulf %31, %32 : vector<64x128xf32>
    %34 = arith.addf %30, %33 : vector<64x128xf32>
    %c126_i32_28 = arith.constant 126 : i32
    %35 = tpu.dynamic_rotate %27 by %c126_i32_28 dim 1 : vector<64x128xf32>, i32 -> vector<64x128xf32>
    %36 = vector.broadcast %5 : f32 to vector<64x128xf32>
    %37 = arith.mulf %35, %36 : vector<64x128xf32>
    %38 = arith.addf %34, %37 : vector<64x128xf32>
    %c2_29 = arith.constant 2 : index
    %c0_30 = arith.constant 0 : index
    %39 = vector.load %arg6[%c2_29, %c0_30] : memref<72x128xf32, #tpu.memory_space<vmem>>, vector<64x128xf32>
    %40 = vector.broadcast %6 : f32 to vector<64x128xf32>
    %41 = arith.mulf %39, %40 : vector<64x128xf32>
    %42 = arith.addf %38, %41 : vector<64x128xf32>
    %c127_i32_31 = arith.constant 127 : i32
    %43 = tpu.dynamic_rotate %39 by %c127_i32_31 dim 1 : vector<64x128xf32>, i32 -> vector<64x128xf32>
    %44 = vector.broadcast %7 : f32 to vector<64x128xf32>
    %45 = arith.mulf %43, %44 : vector<64x128xf32>
    %46 = arith.addf %42, %45 : vector<64x128xf32>
    %c126_i32_32 = arith.constant 126 : i32
    %47 = tpu.dynamic_rotate %39 by %c126_i32_32 dim 1 : vector<64x128xf32>, i32 -> vector<64x128xf32>
    %48 = vector.broadcast %8 : f32 to vector<64x128xf32>
    %49 = arith.mulf %47, %48 : vector<64x128xf32>
    %50 = arith.addf %46, %49 : vector<64x128xf32>
    %51 = vector.extract_strided_slice %50 {offsets = [0, 0], sizes = [64, 14], strides = [1, 1]} : vector<64x128xf32> to vector<64x14xf32>
    %c0_33 = arith.constant 0 : index
    %c0_34 = arith.constant 0 : index
    %52 = vector.load %arg5[%c0_33, %c0_34] : memref<64x14xf32, #tpu.memory_space<vmem>>, vector<64x14xf32>
    tpu.vector_store %arg5[%c0_33, %c0_34], %51 {strides = array<i32>} : memref<64x14xf32, #tpu.memory_space<vmem>>, vector<64x14xf32>,
    return
  }
  func.func @transform_0(%arg0: i32) -> (i32, i32) {
    %c0_i32 = arith.constant 0 : i32
    %c0_i32_0 = arith.constant 0 : i32
    return %arg0, %c0_i32 : i32, i32
  }
  func.func @transform_1(%arg0: i32) -> (i32, i32) {
    %c1_i32 = arith.constant 1 : i32
    %0 = arith.addi %arg0, %c1_i32 : i32
    %c8_i32 = arith.constant 8 : i32
    %1 = arith.muli %0, %c8_i32 : i32
    %c1_i32_0 = arith.constant 1 : i32
    %2 = arith.minsi %1, %c1_i32_0 : i32
    %c0_i32 = arith.constant 0 : i32
    %c0_i32_1 = arith.constant 0 : i32
    return %2, %c0_i32 : i32, i32
  }
  func.func @transform_2(%arg0: i32) -> (i32, i32) {
    %c0_i32 = arith.constant 0 : i32
    %c0_i32_0 = arith.constant 0 : i32
    %c0_i32_1 = arith.constant 0 : i32
    return %c0_i32, %c0_i32_0 : i32, i32
  }
  func.func @transform_3(%arg0: i32) -> i32 {
    %c0_i32 = arith.constant 0 : i32
    %c0_i32_0 = arith.constant 0 : i32
    return %c0_i32 : i32
  }
  func.func @transform_4(%arg0: i32) -> (i32, i32) {
    %c0_i32 = arith.constant 0 : i32
    %c0_i32_0 = arith.constant 0 : i32
    return %arg0, %c0_i32 : i32, i32
  }
}

</mosaic_0001>

<bundles_post_ra>
// kernel: tpu_custom_call.1
= control target key start
LH: loop header
LB: loop body
LE: loop exit
PB: predicated region body
PF: predicated region fallthrough
CT: control target
= control target key end

     0   :  { %10 = vsyncpa [#allocation5], 0  ;;  %s827_s0 = inlined_call_operand.hbm [shape: f32[16,16], index: 0, kind: input, shape index: {}]   ;;  %s828_s1 = inlined_call_operand.hbm [shape: f32[16,16], index: 1, kind: input, shape index: {}]   ;;  %s829_s2 = inlined_call_operand.vmem [shape: f32[3,3], index: 2, kind: input, shape index: {}]   ;;  %s830_s3 = inlined_call_operand.<no memory space> [shape: f32[1], index: 3, kind: input, shape index: {}]   ;;  %s831_s4 = inlined_call_operand.hbm [shape: f32[14,14], index: 4, kind: output, shape index: {}]  }
   0x1   :  { %11 = vsyncpa [#allocation9], 0 }
   0x2   :  { %12 = vsyncpa [#allocation7], 0 }
   0x3   :  { %13 = vsyncpa [#allocation6], 0 }
   0x4   :  { %18 = vsyncadd [#allocation5], 768  ;;  %s505_s15 = smov [#allocation4]   ;;  %s541_s19 = scalar_lea.hbm %s828_s1, 128 }
   0x5   :  { %s19_s16 = sshll.u32 %s505_s15, 4  ;;  %s416_s22 = scalar_lea.hbm %s827_s0, 256  ;;  %s20_s16 = int_to_ptr.vmem [resolvable:$true] %s19_s16 }
   0x6   :  { %p417_p0 = scmp.ne.s32.totalorder %s827_s0, %s416_s22  ;;  %p420_p1 = scmp.lt.u32.totalorder %s416_s22, %s827_s0 }
   0x8   :  { %p422_p2 = pnand %p420_p1, %p417_p0 }
   0xa   :  { %425 = shalt.err (!%p422_p2)
}
   0xb   :  { %s426_s27 = scalar_lea.vmem %s20_s16, 256  ;;  %s430_s28 = scalar_lea.vmem %s20_s16, 1024 }
   0xc   :  { %p427_p3 = scmp.ne.s32.totalorder %s20_s16, %s426_s27  ;;  %p431_p4 = scmp.lt.s32.totalorder %s20_s16, %s20_s16 }
   0xd   :  { %p432_p5 = scmp.lt.s32.totalorder %s430_s28, %s426_s27 }
   0xf   :  { %p433_p6 = por %p432_p5, %p431_p4 }
  0x11   :  { %p434_p7 = pnand %p433_p6, %p427_p3 }
  0x13   :  { %437 = shalt.err (!%p434_p7)
}
  0x14   :  { %s506_s29 = smov 128   ;;  %s507_s30 = smov 8  }
  0x15   :  { %25 = dma.hbm_to_vmem [thread:$0]  %s827_s0, 256, %s20_s16, [#allocation5], %s506_s29, %s506_s29, %s507_s30  }
  0x16   :  { %s48_s9 = sshll.u32 %s829_s2, 4  ;;  %s508_s10 = smov [#allocation8]   ;;  %s49_s9 = int_to_ptr.vmem [resolvable:$true] %s48_s9 }
  0x17   :  { %s38_s11 = sshll.u32 %s508_s10, 4  ;;  %s462_s14 = scalar_lea.hbm %s828_s1, 256  ;;  %s39_s11 = int_to_ptr.vmem [resolvable:$true] %s38_s11 }
  0x18   :  { %p439_p8 = scmp.ne.s32.totalorder %s541_s19, %s462_s14  ;;  %p441_p9 = scmp.lt.u32.totalorder %s541_s19, %s828_s1 }
  0x19   :  { %p442_p10 = scmp.lt.u32.totalorder %s462_s14, %s462_s14  ;;  %p444_p12 = scmp.lt.u32.totalorder %s462_s14, %s541_s19 }
  0x1b   :  { %p443_p11 = por %p442_p10, %p441_p9 }
  0x1d   :  { %p445_p13 = por %p444_p12, %p443_p11 }
  0x1f   :  { %p446_p0 = pnand %p445_p13, %p439_p8 }
  0x21   :  { %449 = shalt.err (!%p446_p0)
}
  0x22   :  { %s450_s0 = scalar_lea.vmem %s39_s11, 128  ;;  %p455_p2 = scmp.lt.s32.totalorder %s39_s11, %s39_s11 }
  0x23   :  { %p451_p1 = scmp.ne.s32.totalorder %s39_s11, %s450_s0  ;;  %p456_p3 = scmp.lt.s32.totalorder %s450_s0, %s450_s0 }
  0x25   :  { %p457_p4 = por %p456_p3, %p455_p2 }
  0x27   :  { %p458_p5 = pnand %p457_p4, %p451_p1 }
  0x29   :  { %461 = shalt.err (!%p458_p5)
}
  0x2a   :  { %41 = dma.hbm_to_vmem [thread:$0]  %s541_s19, 128, %s39_s11, [#allocation9]  }
  0x2b   :  { %s463_s2 = scalar_lea.vmem %s49_s9, 64  ;;  %p468_p7 = scmp.lt.s32.totalorder %s49_s9, %s49_s9 }
  0x2c   :  { %p464_p6 = scmp.ne.s32.totalorder %s49_s9, %s463_s2  ;;  %p469_p9 = scmp.lt.s32.totalorder %s463_s2, %s463_s2 }
  0x2e   :  { %p470_p10 = por %p469_p9, %p468_p7 }
  0x30   :  { %p471_p11 = pnand %p470_p10, %p464_p6 }
  0x32   :  { %474 = shalt.err (!%p471_p11)
}
  0x33   :  { %s509_s1 = smov [#allocation10]  }
  0x34   :  { %51 = dma.vmem_to_smem %s49_s9, 64, %s509_s1, [#allocation7]  }
  0x35   :  { %497 = dma.done.wait [#allocation5], 1024  }
  0x36   :  { %498 = vsyncadd [#allocation5], 4294966272 }
  0x37   :  { %499 = dma.done.wait [#allocation9], 128  }
  0x38   :  { %500 = vsyncadd [#allocation9], 4294967168 }
  0x39   :  { %501 = dma.done.wait [#allocation7], 64  }
  0x3a   :  { %502 = vsyncadd [#allocation7], 4294967232 }
  0x3b   :  { %63 = sfence }
  0x3c   :  { %v571_v0 = vld [vmem:[#allocation4 + $0x10] sm:$0xff]  ;;  %v573_v1 = vld [vmem:[#allocation4] sm:$0xff]  ;;  %v575_v2 = vld [vmem:[#allocation4 + $0x18] sm:$0xff]  ;;  %s510_s16 = smov 127   ;;  %s511_s18 = smov 126   ;;  %v113_v28 = vstv %s830_s3  ;;  %vm370_vm0 = vcmask 113664  }
  0x3d   :  { %88 = vst [vmem:[#allocation2 + $0x10] sm:$0xff] %v571_v0  ;;  %126 = vrot.lane.b32.xlu1 %v571_v0, %s510_s16  ;;  %86 = vst [vmem:[#allocation2] sm:$0xff] %v573_v1  ;;  %122 = vrot.lane.b32.xlu0 %v573_v1, %s510_s16  ;;  %v584_v3 = vld [vmem:[#allocation4 + $0x8] sm:$0xff]  ;;  %v588_v5 = vld [vmem:[#allocation4 + $0x20] sm:$0xff]  ;;  %s68_s19 = sld [smem:[#allocation10]]  ;;  %s400_s20 = sld [smem:[#allocation10 + $0x1]] }
  0x3e   :  { %89 = vst [vmem:[#allocation2 + $0x18] sm:$0xff] %v575_v2  ;;  %v586_v4 = vld [vmem:[#allocation4 + $0x28] sm:$0xff]  ;;  %87 = vst [vmem:[#allocation2 + $0x8] sm:$0xff] %v584_v3  ;;  %v593_v6 = vld [vmem:[#allocation4 + $0x38] sm:$0xff]  ;;  %s402_s23 = sld [smem:[#allocation10 + $0x80]]  ;;  %s401_s3 = sld [smem:[#allocation10 + $0x2]] }
  0x3f   :  { %91 = vst [vmem:[#allocation2 + $0x28] sm:$0xff] %v586_v4  ;;  %90 = vst [vmem:[#allocation2 + $0x20] sm:$0xff] %v588_v5  ;;  %v595_v7 = vld [vmem:[#allocation4 + $0x30] sm:$0xff]  ;;  %v94_v8 = vld [vmem:[#allocation8] sm:$0xff]  ;;  %s403_s24 = sld [smem:[#allocation10 + $0x81]]  ;;  %s404_s25 = sld [smem:[#allocation10 + $0x82]] }
  0x40   :  { %93 = vst [vmem:[#allocation2 + $0x38] sm:$0xff] %v593_v6  ;;  %92 = vst [vmem:[#allocation2 + $0x30] sm:$0xff] %v595_v7  ;;  %s405_s26 = sld [smem:[#allocation10 + $0x100]]  ;;  %s406_s27 = sld [smem:[#allocation10 + $0x101]] }
  0x41   :  { %95 = vst [vmem:[#allocation2 + $0x40] sm:$0xff] %v94_v8  ;;  %128 = vrot.lane.b32.xlu1 %v575_v2, %s510_s16  ;;  %124 = vrot.lane.b32.xlu0 %v584_v3, %s510_s16  ;;  %s407_s28 = sld [smem:[#allocation10 + $0x102]] }
  0x43   :  { %v104_v25 = vstv %s68_s19  ;;  %v138_v29 = vstv %s400_s20 }
  0x44   :  { %v107_v26 = vmul.f32 %v104_v25, %v571_v0  ;;  %v105_v27 = vmul.f32 %v104_v25, %v573_v1  ;;  %v108_v30 = vmul.f32 %v104_v25, %v575_v2  ;;  %v110_v37 = vmul.f32 %v104_v25, %v586_v4 }
  0x45   :  { %132 = vrot.lane.b32.xlu1 %v586_v4, %s510_s16  ;;  %130 = vrot.lane.b32.xlu0 %v588_v5, %s510_s16  ;;  %v627_v9 = vld [vmem:[#allocation2 + $0x9] sm:$0xff]  ;;  %v629_v10 = vld [vmem:[#allocation2 + $0x1] sm:$0xff]  ;;  %v637_v12 = vld [vmem:[#allocation2 + $0x11] sm:$0xff]  ;;  %v109_v38 = vmul.f32 %v104_v25, %v588_v5  ;;  %v112_v45 = vmul.f32 %v104_v25, %v593_v6  ;;  %v111_v46 = vmul.f32 %v104_v25, %v595_v7  ;;  %v196_v59 = vstv %s402_s23 }
  0x46   :  { %v635_v11 = vld [vmem:[#allocation2 + $0x19] sm:$0xff]  ;;  %v645_v14 = vld [vmem:[#allocation2 + $0x21] sm:$0xff]  ;;  %v675_v17 = vld [vmem:[#allocation2 + $0xa] sm:$0xff]  ;;  %v116_v31 = vadd.f32 %v113_v28, %v107_v26  ;;  %v114_v32 = vadd.f32 %v113_v28, %v105_v27  ;;  %v117_v41 = vadd.f32 %v113_v28, %v108_v30  ;;  %v119_v48 = vadd.f32 %v113_v28, %v110_v37 }
  0x47   :  { %v643_v13 = vld [vmem:[#allocation2 + $0x29] sm:$0xff]  ;;  %v653_v16 = vld [vmem:[#allocation2 + $0x31] sm:$0xff]  ;;  %v683_v19 = vld [vmem:[#allocation2 + $0x1a] sm:$0xff]  ;;  %v118_v49 = vadd.f32 %v113_v28, %v109_v38  ;;  %v106_v52 = vmul.f32 %v104_v25, %v584_v3  ;;  %v121_v57 = vadd.f32 %v113_v28, %v112_v45  ;;  %v120_v58 = vadd.f32 %v113_v28, %v111_v46 }
  0x48   :  { %v651_v15 = vld [vmem:[#allocation2 + $0x39] sm:$0xff]  ;;  %v677_v18 = vld [vmem:[#allocation2 + $0x2] sm:$0xff]  ;;  %v691_v21 = vld [vmem:[#allocation2 + $0x2a] sm:$0xff]  ;;  %v197_v8 = vmul.f32 %v196_v59, %v629_v10 }
  0x49   :  { %136 = vrot.lane.b32.xlu1 %v593_v6, %s510_s16  ;;  %134 = vrot.lane.b32.xlu0 %v595_v7, %s510_s16  ;;  %v685_v20 = vld [vmem:[#allocation2 + $0x12] sm:$0xff]  ;;  %v693_v22 = vld [vmem:[#allocation2 + $0x22] sm:$0xff]  ;;  %v699_v23 = vld [vmem:[#allocation2 + $0x3a] sm:$0xff]  ;;  %v115_v62 = vadd.f32 %v113_v28, %v106_v52  ;;  %v199_v28 = vmul.f32 %v196_v59, %v637_v12 }
  0x4a   :  { %v701_v24 = vld [vmem:[#allocation2 + $0x32] sm:$0xff] }
  0x4d   :  { %157 = vrot.lane.b32.xlu1 %v584_v3, %s511_s18  ;;  %155 = vrot.lane.b32.xlu0 %v573_v1, %s511_s18 }
  0x51   :  { %161 = vrot.lane.b32.xlu1 %v575_v2, %s511_s18  ;;  %159 = vrot.lane.b32.xlu0 %v571_v0, %s511_s18  ;;  %v171_v2 = vstv %s401_s3 }
  0x55   :  { %165 = vrot.lane.b32.xlu1 %v586_v4, %s511_s18  ;;  %163 = vrot.lane.b32.xlu0 %v588_v5, %s511_s18 }
  0x59   :  { %169 = vrot.lane.b32.xlu1 %v593_v6, %s511_s18  ;;  %167 = vrot.lane.b32.xlu0 %v595_v7, %s511_s18  ;;  %v198_v6 = vmul.f32 %v196_v59, %v627_v9 }
  0x5d   :  { %215 = vrot.lane.b32.xlu1 %v627_v9, %s510_s16  ;;  %213 = vrot.lane.b32.xlu0 %v629_v10, %s510_s16 }
  0x61   :  { %219 = vrot.lane.b32.xlu1 %v635_v11, %s510_s16  ;;  %217 = vrot.lane.b32.xlu0 %v637_v12, %s510_s16 }
  0x65   :  { %223 = vrot.lane.b32.xlu1 %v643_v13, %s510_s16  ;;  %221 = vrot.lane.b32.xlu0 %v645_v14, %s510_s16 }
  0x69   :  { %227 = vrot.lane.b32.xlu1 %v651_v15, %s510_s16  ;;  %225 = vrot.lane.b32.xlu0 %v653_v16, %s510_s16 }
  0x6d   :  { %248 = vrot.lane.b32.xlu1 %v627_v9, %s511_s18  ;;  %246 = vrot.lane.b32.xlu0 %v629_v10, %s511_s18  ;;  %v201_v10 = vmul.f32 %v196_v59, %v645_v14 }
  0x71   :  { %252 = vrot.lane.b32.xlu1 %v635_v11, %s511_s18  ;;  %250 = vrot.lane.b32.xlu0 %v637_v12, %s511_s18 }
  0x75   :  { %256 = vrot.lane.b32.xlu1 %v643_v13, %s511_s18  ;;  %254 = vrot.lane.b32.xlu0 %v645_v14, %s511_s18 }
  0x79   :  { %260 = vrot.lane.b32.xlu1 %v651_v15, %s511_s18  ;;  %258 = vrot.lane.b32.xlu0 %v653_v16, %s511_s18 }
  0x7d   :  { %306 = vrot.lane.b32.xlu1 %v675_v17, %s510_s16  ;;  %304 = vrot.lane.b32.xlu0 %v677_v18, %s510_s16 }
  0x81   :  { %310 = vrot.lane.b32.xlu1 %v683_v19, %s510_s16  ;;  %308 = vrot.lane.b32.xlu0 %v685_v20, %s510_s16 }
  0x85   :  { %314 = vrot.lane.b32.xlu1 %v691_v21, %s510_s16  ;;  %312 = vrot.lane.b32.xlu0 %v693_v22, %s510_s16 }
  0x89   :  { %318 = vrot.lane.b32.xlu1 %v699_v23, %s510_s16  ;;  %316 = vrot.lane.b32.xlu0 %v701_v24, %s510_s16 }
  0x8d   :  { %339 = vrot.lane.b32.xlu1 %v675_v17, %s511_s18  ;;  %337 = vrot.lane.b32.xlu0 %v677_v18, %s511_s18 }
  0x91   :  { %343 = vrot.lane.b32.xlu1 %v683_v19, %s511_s18  ;;  %341 = vrot.lane.b32.xlu0 %v685_v20, %s511_s18 }
  0x95   :  { %347 = vrot.lane.b32.xlu1 %v691_v21, %s511_s18  ;;  %345 = vrot.lane.b32.xlu0 %v693_v22, %s511_s18 }
  0x99   :  { %351 = vrot.lane.b32.xlu1 %v699_v23, %s511_s18  ;;  %349 = vrot.lane.b32.xlu0 %v701_v24, %s511_s18 }
  0xaf   :  { %v127_v33 = vpop.permute.xlu1 %126  ;;  %v123_v34 = vpop.permute.xlu0 %122 }
  0xb0   :  { %v141_v35 = vmul.f32 %v138_v29, %v127_v33  ;;  %v139_v36 = vmul.f32 %v138_v29, %v123_v34 }
  0xb2   :  { %v149_v39 = vadd.f32 %v141_v35, %v116_v31  ;;  %v147_v40 = vadd.f32 %v139_v36, %v114_v32  ;;  %v200_v32 = vmul.f32 %v196_v59, %v635_v11 }
  0xb3   :  { %v129_v42 = vpop.permute.xlu1 %128  ;;  %v125_v43 = vpop.permute.xlu0 %124 }
  0xb4   :  { %v142_v44 = vmul.f32 %v138_v29, %v129_v42  ;;  %v140_v63 = vmul.f32 %v138_v29, %v125_v43 }
  0xb6   :  { %v150_v47 = vadd.f32 %v142_v44, %v117_v41  ;;  %v148_v25 = vadd.f32 %v140_v63, %v115_v62  ;;  %v202_v41 = vmul.f32 %v196_v59, %v643_v13 }
  0xb7   :  { %v133_v50 = vpop.permute.xlu1 %132  ;;  %v131_v51 = vpop.permute.xlu0 %130 }
  0xb8   :  { %v144_v53 = vmul.f32 %v138_v29, %v133_v50  ;;  %v143_v54 = vmul.f32 %v138_v29, %v131_v51 }
  0xba   :  { %v152_v55 = vadd.f32 %v144_v53, %v119_v48  ;;  %v151_v56 = vadd.f32 %v143_v54, %v118_v49  ;;  %v204_v48 = vmul.f32 %v196_v59, %v651_v15  ;;  %v203_v49 = vmul.f32 %v196_v59, %v653_v16 }
  0xbb   :  { %v137_v60 = vpop.permute.xlu1 %136  ;;  %v135_v61 = vpop.permute.xlu0 %134 }
  0xbc   :  { %v146_v0 = vmul.f32 %v138_v29, %v137_v60  ;;  %v145_v1 = vmul.f32 %v138_v29, %v135_v61 }
  0xbe   :  { %v154_v4 = vadd.f32 %v146_v0, %v121_v57  ;;  %v153_v5 = vadd.f32 %v145_v1, %v120_v58 }
  0xbf   :  { %v158_v7 = vpop.permute.xlu1 %157  ;;  %v156_v3 = vpop.permute.xlu0 %155 }
  0xc0   :  { %v173_v26 = vmul.f32 %v171_v2, %v158_v7  ;;  %v172_v27 = vmul.f32 %v171_v2, %v156_v3  ;;  %v229_v7 = vstv %s403_s24 }
  0xc2   :  { %v181_v30 = vadd.f32 %v173_v26, %v148_v25  ;;  %v180_v31 = vadd.f32 %v172_v27, %v147_v40  ;;  %v262_v25 = vstv %s404_s25 }
  0xc3   :  { %v162_v33 = vpop.permute.xlu1 %161  ;;  %v160_v29 = vpop.permute.xlu0 %159 }
  0xc4   :  { %v175_v34 = vmul.f32 %v171_v2, %v162_v33  ;;  %v174_v35 = vmul.f32 %v171_v2, %v160_v29  ;;  %v206_v36 = vadd.f32 %v198_v6, %v181_v30  ;;  %v205_v37 = vadd.f32 %v197_v8, %v180_v31 }
  0xc6   :  { %v183_v9 = vadd.f32 %v175_v34, %v150_v47  ;;  %v182_v38 = vadd.f32 %v174_v35, %v149_v39 }
  0xc7   :  { %v166_v42 = vpop.permute.xlu1 %165  ;;  %v164_v43 = vpop.permute.xlu0 %163 }
  0xc8   :  { %v177_v44 = vmul.f32 %v171_v2, %v166_v42  ;;  %v176_v40 = vmul.f32 %v171_v2, %v164_v43  ;;  %v740_v45 = vadd.f32 %v200_v32, %v183_v9  ;;  %v742_v11 = vadd.f32 %v199_v28, %v182_v38 }
  0xc9   :  { %v758_v32 = vstv %s405_s26 }
  0xca   :  { %v185_v12 = vadd.f32 %v177_v44, %v152_v55  ;;  %v184_v46 = vadd.f32 %v176_v40, %v151_v56  ;;  %v289_v35 = vmul.f32 %v758_v32, %v675_v17  ;;  %v288_v42 = vmul.f32 %v758_v32, %v677_v18 }
  0xcb   :  { %v170_v47 = vpop.permute.xlu1 %169  ;;  %v168_v39 = vpop.permute.xlu0 %167  ;;  %v764_v40 = vstv %s406_s27 }
  0xcc   :  { %v179_v50 = vmul.f32 %v171_v2, %v170_v47  ;;  %v178_v13 = vmul.f32 %v171_v2, %v168_v39  ;;  %v746_v51 = vadd.f32 %v202_v41, %v185_v12  ;;  %v748_v14 = vadd.f32 %v201_v10, %v184_v46 }
  0xce   :  { %v187_v52 = vadd.f32 %v179_v50, %v154_v4  ;;  %v186_v53 = vadd.f32 %v178_v13, %v153_v5 }
  0xcf   :  { %v216_v54 = vpop.permute.xlu1 %215  ;;  %v214_v57 = vpop.permute.xlu0 %213 }
  0xd0   :  { %v750_v58 = vadd.f32 %v204_v48, %v187_v52  ;;  %v752_v55 = vadd.f32 %v203_v49, %v186_v53  ;;  %v231_v26 = vmul.f32 %v229_v7, %v216_v54  ;;  %v230_v27 = vmul.f32 %v229_v7, %v214_v57 }
  0xd1   :  { %v293_v52 = vmul.f32 %v758_v32, %v691_v21  ;;  %v776_v54 = vstv %s407_s28 }
  0xd2   :  { %v239_v29 = vadd.f32 %v231_v26, %v206_v36  ;;  %v238_v34 = vadd.f32 %v230_v27, %v205_v37  ;;  %v291_v36 = vmul.f32 %v758_v32, %v683_v19  ;;  %v290_v37 = vmul.f32 %v758_v32, %v685_v20 }
  0xd3   :  { %v220_v56 = vpop.permute.xlu1 %219  ;;  %v218_v15 = vpop.permute.xlu0 %217 }
  0xd4   :  { %v233_v9 = vmul.f32 %v229_v7, %v220_v56  ;;  %v232_v38 = vmul.f32 %v229_v7, %v218_v15 }
  0xd6   :  { %v241_v49 = vadd.f32 %v233_v9, %v740_v45  ;;  %v240_v47 = vadd.f32 %v232_v38, %v742_v11  ;;  %v292_v45 = vmul.f32 %v758_v32, %v693_v22 }
  0xd7   :  { %v224_v60 = vpop.permute.xlu1 %223  ;;  %v222_v16 = vpop.permute.xlu0 %221 }
  0xd8   :  { %v235_v17 = vmul.f32 %v229_v7, %v224_v60  ;;  %v234_v48 = vmul.f32 %v229_v7, %v222_v16 }
  0xda   :  { %v243_v11 = vadd.f32 %v235_v17, %v746_v51  ;;  %v242_v60 = vadd.f32 %v234_v48, %v748_v14 }
  0xdb   :  { %v228_v59 = vpop.permute.xlu1 %227  ;;  %v226_v61 = vpop.permute.xlu0 %225 }
  0xdc   :  { %v237_v16 = vmul.f32 %v229_v7, %v228_v59 }
  0xdf   :  { %v249_v62 = vpop.permute.xlu1 %248  ;;  %v247_v63 = vpop.permute.xlu0 %246 }
  0xe0   :  { %v264_v28 = vmul.f32 %v262_v25, %v249_v62  ;;  %v263_v33 = vmul.f32 %v262_v25, %v247_v63  ;;  %v236_v62 = vmul.f32 %v229_v7, %v226_v61 }
  0xe2   :  { %v272_v43 = vadd.f32 %v264_v28, %v239_v29  ;;  %v271_v44 = vadd.f32 %v263_v33, %v238_v34  ;;  %v245_v28 = vadd.f32 %v237_v16, %v750_v58  ;;  %v295_v58 = vmul.f32 %v758_v32, %v699_v23 }
  0xe3   :  { %v253_v0 = vpop.permute.xlu1 %252  ;;  %v251_v1 = vpop.permute.xlu0 %250 }
  0xe4   :  { %v266_v12 = vmul.f32 %v262_v25, %v253_v0  ;;  %v265_v46 = vmul.f32 %v262_v25, %v251_v1  ;;  %v297_v53 = vadd.f32 %v289_v35, %v272_v43  ;;  %v296_v19 = vadd.f32 %v288_v42, %v271_v44 }
  0xe6   :  { %v274_v20 = vadd.f32 %v266_v12, %v241_v49  ;;  %v273_v57 = vadd.f32 %v265_v46, %v240_v47 }
  0xe7   :  { %v257_v2 = vpop.permute.xlu1 %256  ;;  %v255_v4 = vpop.permute.xlu0 %254 }
  0xe8   :  { %v268_v56 = vmul.f32 %v262_v25, %v257_v2  ;;  %v267_v15 = vmul.f32 %v262_v25, %v255_v4  ;;  %v299_v51 = vadd.f32 %v291_v36, %v274_v20  ;;  %v298_v27 = vadd.f32 %v290_v37, %v273_v57 }
  0xea   :  { %v276_v22 = vadd.f32 %v268_v56, %v243_v11  ;;  %v275_v26 = vadd.f32 %v267_v15, %v242_v60 }
  0xeb   :  { %v754_v5 = vpop.permute.xlu1 %260  ;;  %v756_v6 = vpop.permute.xlu0 %258 }
  0xec   :  { %v270_v14 = vmul.f32 %v262_v25, %v754_v5  ;;  %v269_v59 = vmul.f32 %v262_v25, %v756_v6  ;;  %v301_v25 = vadd.f32 %v293_v52, %v276_v22  ;;  %v300_v38 = vadd.f32 %v292_v45, %v275_v26 }
  0xef   :  { %v307_v3 = vpop.permute.xlu1 %306  ;;  %v305_v8 = vpop.permute.xlu0 %304 }
  0xf0   :  { %v322_v18 = vmul.f32 %v764_v40, %v307_v3  ;;  %v321_v39 = vmul.f32 %v764_v40, %v305_v8 }
  0xf2   :  { %v330_v63 = vadd.f32 %v322_v18, %v297_v53  ;;  %v329_v21 = vadd.f32 %v321_v39, %v296_v19 }
  0xf3   :  { %v311_v30 = vpop.permute.xlu1 %310  ;;  %v309_v31 = vpop.permute.xlu0 %308 }
  0xf4   :  { %v324_v3 = vmul.f32 %v764_v40, %v311_v30  ;;  %v323_v8 = vmul.f32 %v764_v40, %v309_v31  ;;  %v244_v30 = vadd.f32 %v236_v62, %v752_v55  ;;  %v294_v55 = vmul.f32 %v758_v32, %v701_v24 }
  0xf6   :  { %v332_v35 = vadd.f32 %v324_v3, %v299_v51  ;;  %v331_v9 = vadd.f32 %v323_v8, %v298_v27 }
  0xf7   :  { %v315_v41 = vpop.permute.xlu1 %314  ;;  %v313_v10 = vpop.permute.xlu0 %312 }
  0xf8   :  { %v326_v31 = vmul.f32 %v764_v40, %v315_v41  ;;  %v325_v33 = vmul.f32 %v764_v40, %v313_v10  ;;  %v278_v41 = vadd.f32 %v270_v14, %v245_v28  ;;  %v277_v10 = vadd.f32 %v269_v59, %v244_v30 }
  0xfa   :  { %v334_v44 = vadd.f32 %v326_v31, %v301_v25  ;;  %v333_v12 = vadd.f32 %v325_v33, %v300_v38  ;;  %v303_v32 = vadd.f32 %v295_v58, %v278_v41  ;;  %v302_v48 = vadd.f32 %v294_v55, %v277_v10 }
  0xfb   :  { %v319_v50 = vpop.permute.xlu1 %318  ;;  %v317_v13 = vpop.permute.xlu0 %316 }
  0xfc   :  { %v328_v37 = vmul.f32 %v764_v40, %v319_v50  ;;  %v327_v17 = vmul.f32 %v764_v40, %v317_v13 }
  0xfe   :  { %v336_v52 = vadd.f32 %v328_v37, %v303_v32  ;;  %v335_v53 = vadd.f32 %v327_v17, %v302_v48 }
  0xff   :  { %v340_v0 = vpop.permute.xlu1 %339  ;;  %v338_v1 = vpop.permute.xlu0 %337 }
 0x100   :  { %v355_v2 = vmul.f32 %v776_v54, %v340_v0  ;;  %v354_v4 = vmul.f32 %v776_v54, %v338_v1 }
 0x102   :  { %v363_v61 = vadd.f32 %v355_v2, %v330_v63  ;;  %v362_v7 = vadd.f32 %v354_v4, %v329_v21 }
 0x103   :  { %v344_v29 = vpop.permute.xlu1 %343  ;;  %v342_v34 = vpop.permute.xlu0 %341 }
 0x104   :  { %372 = vst.msk [vmem:[#allocation11 + $0x8] sm:$0xff] %vm370_vm0, %v363_v61  ;;  %371 = vst.msk [vmem:[#allocation11] sm:$0xff] %vm370_vm0, %v362_v7  ;;  %v357_v5 = vmul.f32 %v776_v54, %v344_v29  ;;  %v356_v6 = vmul.f32 %v776_v54, %v342_v34 }
 0x106   :  { %v365_v42 = vadd.f32 %v357_v5, %v332_v35  ;;  %v364_v43 = vadd.f32 %v356_v6, %v331_v9 }
 0x107   :  { %v348_v46 = vpop.permute.xlu1 %347  ;;  %v346_v36 = vpop.permute.xlu0 %345 }
 0x108   :  { %374 = vst.msk [vmem:[#allocation11 + $0x18] sm:$0xff] %vm370_vm0, %v365_v42  ;;  %373 = vst.msk [vmem:[#allocation11 + $0x10] sm:$0xff] %vm370_vm0, %v364_v43  ;;  %v359_v23 = vmul.f32 %v776_v54, %v348_v46  ;;  %v358_v24 = vmul.f32 %v776_v54, %v346_v36 }
 0x10a   :  { %v367_v49 = vadd.f32 %v359_v23, %v334_v44  ;;  %v366_v47 = vadd.f32 %v358_v24, %v333_v12 }
 0x10b   :  { %v352_v18 = vpop.permute.xlu1 %351  ;;  %v350_v39 = vpop.permute.xlu0 %349 }
 0x10c   :  { %376 = vst.msk [vmem:[#allocation11 + $0x28] sm:$0xff] %vm370_vm0, %v367_v49  ;;  %375 = vst.msk [vmem:[#allocation11 + $0x20] sm:$0xff] %vm370_vm0, %v366_v47  ;;  %v361_v40 = vmul.f32 %v776_v54, %v352_v18  ;;  %v360_v50 = vmul.f32 %v776_v54, %v350_v39 }
 0x10e   :  { %v369_v13 = vadd.f32 %v361_v40, %v336_v52  ;;  %v368_v19 = vadd.f32 %v360_v50, %v335_v53 }
 0x110   :  { %378 = vst.msk [vmem:[#allocation11 + $0x38] sm:$0xff] %vm370_vm0, %v369_v13  ;;  %377 = vst.msk [vmem:[#allocation11 + $0x30] sm:$0xff] %vm370_vm0, %v368_v19 }
 0x111   :  { %383 = vsyncadd [#allocation6], 768  ;;  %s512_s5 = smov [#allocation11]  }
 0x112   :  { %s384_s6 = sshll.u32 %s512_s5, 4  ;;  %s385_s6 = int_to_ptr.vmem [resolvable:$true] %s384_s6 }
 0x113   :  { %s475_s7 = scalar_lea.vmem %s385_s6, 256  ;;  %s479_s8 = scalar_lea.vmem %s385_s6, 1024 }
 0x114   :  { %p476_p8 = scmp.ne.s32.totalorder %s385_s6, %s475_s7  ;;  %p480_p12 = scmp.lt.s32.totalorder %s385_s6, %s385_s6 }
 0x115   :  { %p481_p13 = scmp.lt.s32.totalorder %s479_s8, %s475_s7 }
 0x117   :  { %p482_p0 = por %p481_p13, %p480_p12 }
 0x119   :  { %p483_p1 = pnand %p482_p0, %p476_p8 }
 0x11b   :  { %486 = shalt.err (!%p483_p1)
}
 0x11c   :  { %s487_s11 = scalar_lea.hbm %s831_s4, 256 }
 0x11d   :  { %p488_p2 = scmp.ne.s32.totalorder %s831_s4, %s487_s11  ;;  %p491_p3 = scmp.lt.u32.totalorder %s487_s11, %s831_s4 }
 0x11f   :  { %p493_p4 = pnand %p491_p3, %p488_p2 }
 0x121   :  { %496 = shalt.err (!%p493_p4)
}
 0x122   :  { %390 = dma.vmem_to_hbm [thread:$0]  %s385_s6, 256, %s831_s4, [#allocation6], %s506_s29, %s506_s29, %s507_s30  }
 0x123   :  { %503 = dma.done.wait [#allocation6], 1024  }
 0x124   :  { %504 = vsyncadd [#allocation6], 4294966272 }
 0x125   :  { %394 = vsyncpa [#allocation5], 1 }
 0x126   :  { %395 = vsyncpa [#allocation9], 1 }
 0x127   :  { %396 = vsyncpa [#allocation6], 1 }
 0x128   :  { %397 = vsyncpa [#allocation7], 1 }

</bundles_post_ra>
